<compile_context>
chip_gen: v7x
topology: tpu7x:2x2x1
jax: 0.10.0
libtpu: 0.0.40
codegen_flags: <defaults>
</compile_context>

<pallas_src>
import functools

import jax
import jax.numpy as jnp
from jax import lax
from jax.experimental import pallas as pl
from jax.experimental.pallas import tpu as pltpu


def _round_up(x, m):
    return (x + m - 1) // m * m


def _malconv_pool_kernel(x_ref, w_ref, b_ref, out_ref, *,
                         tnw, valid_nw, tiles_per_split):
    """One (batch, split, nw-tile) grid step: gated conv + running max-pool."""
    s = pl.program_id(1)                  # reduction split (v7x two-core)
    j = pl.program_id(2)                  # tile index inside the split
    t = s * tiles_per_split + j           # global NW-tile index (may overrun)
    row0 = t * tnw                        # first window row of this tile

    @pl.when(j == 0)
    def _init():
        out_ref[...] = jnp.full(out_ref.shape, -jnp.inf, out_ref.dtype)

    @pl.when(row0 < valid_nw)             # skip tiles with no valid windows
    def _compute():
        # Combined conv_1 / conv_2 matmul: (TNW, K) @ (K, 256) -> [cnn | gate]
        conv = jnp.dot(x_ref[...], w_ref[...],
                       preferred_element_type=jnp.float32) + b_ref[...]
        gated = conv[:, :128] * jax.nn.sigmoid(conv[:, 128:])   # (TNW,128) f32

        @pl.when(row0 + tnw <= valid_nw)  # fully valid tile: mask-free path
        def _full():
            out_ref[...] = jnp.maximum(
                out_ref[...], jnp.max(gated, axis=0, keepdims=True))

        @pl.when(row0 + tnw > valid_nw)   # straddling tile: mask invalid rows
        def _straddle():
            # Rows >= valid_nw are the padded window and/or out-of-bounds
            # garbage from the ragged last block; mask BEFORE the max so
            # NaN/Inf garbage can never leak into the pooled result.
            row = lax.broadcasted_iota(jnp.int32, gated.shape, 0) + row0
            masked = jnp.where(row < valid_nw, gated, -jnp.inf)
            out_ref[...] = jnp.maximum(
                out_ref[...], jnp.max(masked, axis=0, keepdims=True))


def malconv_padding_forward(x_bytes, params, *, input_length, window_size,
                            pad_len, tnw=1024, n_split=2):
    """x_bytes: int32 (B, L) byte values in [0, 256]."""
    B, L = x_bytes.shape
    W = window_size

    # --- glue: pad with constant byte 256, embed (bf16), window, flatten ---
    # TODO(synk): fuse this embedding gather into the kernel to avoid the
    # (B, NW, W*8) bf16 activation tensor in HBM (see header note).
    x_pad = jnp.pad(x_bytes, ((0, 0), (0, pad_len)), constant_values=256)
    T = L + pad_len
    NW = T // W                                       # number of conv windows
    K = W * 8                                         # flatten: idx = k*8 + ch

    emb = params["embed"].astype(jnp.bfloat16)[x_pad]                 # (B,T,8)
    xc = emb[:, :NW * W, :].reshape(B, NW, K)                         # bf16

    pool_size = input_length // window_size
    pool_out = (NW - pool_size) // pool_size + 1
    assert pool_out == 1, "torch .view(-1,128) semantics assumed (pool_out==1)"
    valid_nw = pool_size * pool_out

    # NW tiling.  No HBM-side padding of xc: ragged last tile is masked
    # in-kernel; the grid only covers the valid (pooled) windows.
    TNW = min(_round_up(tnw, 8), _round_up(valid_nw, 8))
    n_tiles = pl.cdiv(valid_nw, TNW)
    n_split_eff = max(1, min(n_split, n_tiles))
    tiles_per_split = pl.cdiv(n_tiles, n_split_eff)

    # Block-diagonal combined weight (K, 256):
    #   cols   0..127 -> conv_1 (emb channels 0..3), cols 128..255 -> conv_2 (4..7)
    w1 = jnp.zeros((W, 8, 128), jnp.float32).at[:, :4, :].set(
        params["conv1_w"].transpose(2, 1, 0))
    w2 = jnp.zeros((W, 8, 128), jnp.float32).at[:, 4:, :].set(
        params["conv2_w"].transpose(2, 1, 0))
    wc = jnp.concatenate([w1.reshape(K, 128), w2.reshape(K, 128)],
                         axis=1).astype(jnp.bfloat16)                 # (K,256)
    bc = jnp.concatenate([params["conv1_b"],
                          params["conv2_b"]]).reshape(1, 256)         # f32

    kernel = functools.partial(_malconv_pool_kernel, tnw=TNW,
                               valid_nw=valid_nw,
                               tiles_per_split=tiles_per_split)

    def x_index_map(b, s, j):
        # Clamp so splits whose tail steps overrun n_tiles never issue an
        # out-of-range block DMA; the kernel skips compute for those steps.
        return (b, jnp.minimum(s * tiles_per_split + j, n_tiles - 1), 0)

    pooled = pl.pallas_call(
        kernel,
        out_shape=jax.ShapeDtypeStruct((B, n_split_eff, 1, 128), jnp.float32),
        grid_spec=pltpu.PrefetchScalarGridSpec(
            num_scalar_prefetch=0,
            grid=(B, n_split_eff, tiles_per_split),   # NW reduction last
            in_specs=[
                pl.BlockSpec((None, TNW, K), x_index_map),
                pl.BlockSpec((K, 256), lambda b, s, j: (0, 0)),
                pl.BlockSpec((1, 256), lambda b, s, j: (0, 0)),
            ],
            out_specs=pl.BlockSpec((None, None, 1, 128),
                                   lambda b, s, j: (b, s, 0, 0)),
        ),
        compiler_params=pltpu.CompilerParams(
            dimension_semantics=("parallel", "parallel", "arbitrary"),
            # 32 MiB fits TNW=1024 double-buffered on every gen (incl. v7x).
            vmem_limit_bytes=32 * 1024 * 1024),
    )(xc, wc, bc)

    # XLA epilogue: combine the per-split partial maxes, then the tiny fc pair
    # (M == batch); keeping them out of the kernel keeps the kernel output
    # lane-dense and avoids a wasted MXU pass per grid step.
    v = jnp.max(pooled, axis=1).reshape(B * pool_out, 128)
    h = v @ params["fc1_w"].T + params["fc1_b"]
    return h @ params["fc2_w"].T + params["fc2_b"]


def _reference(x_bytes, params, *, input_length, window_size, pad_len):
    """Pure-JAX f32 reference following the PyTorch forward literally."""
    W = window_size
    x_pad = jnp.pad(x_bytes, ((0, 0), (0, pad_len)), constant_values=256)
    emb = params["embed"][x_pad]                        # (B, T, 8)
    xt = jnp.transpose(emb, (0, 2, 1))                  # (B, 8, T)  (NCH)
    dn = ("NCH", "OIH", "NCH")
    cnn = lax.conv_general_dilated(xt[:, :4, :], params["conv1_w"], (W,),
                                   "VALID", dimension_numbers=dn)
    cnn = cnn + params["conv1_b"][None, :, None]
    gate = lax.conv_general_dilated(xt[:, 4:, :], params["conv2_w"], (W,),
                                    "VALID", dimension_numbers=dn)
    gate = jax.nn.sigmoid(gate + params["conv2_b"][None, :, None])
    gx = cnn * gate                                     # (B, 128, NW)
    P = input_length // window_size
    pooled = lax.reduce_window(gx, -jnp.inf, lax.max,
                               (1, 1, P), (1, 1, P), "VALID")  # (B,128,1)
    v = pooled.reshape(-1, 128)
    h = v @ params["fc1_w"].T + params["fc1_b"]
    return h @ params["fc2_w"].T + params["fc2_b"]


def _init_params(key, window_size):
    ks = jax.random.split(key, 8)
    W = window_size
    embed = 0.1 * jax.random.normal(ks[0], (257, 8), jnp.float32)
    embed = embed.at[0].set(0.0)                        # padding_idx=0
    return {
        "embed": embed,
        "conv1_w": 0.1 * jax.random.normal(ks[1], (128, 4, W), jnp.float32),
        "conv1_b": 0.1 * jax.random.normal(ks[2], (128,), jnp.float32),
        "conv2_w": 0.1 * jax.random.normal(ks[3], (128, 4, W), jnp.float32),
        "conv2_b": 0.1 * jax.random.normal(ks[4], (128,), jnp.float32),
        "fc1_w": 0.1 * jax.random.normal(ks[5], (128, 128), jnp.float32),
        "fc1_b": jnp.zeros((128,), jnp.float32),
        "fc2_w": 0.1 * jax.random.normal(ks[6], (1, 128), jnp.float32),
        "fc2_b": jnp.zeros((1,), jnp.float32),
    }


if __name__ == "__main__":
    # Small analog of MalConvPadding(input_length=2000000, window_size=500):
    # input_length=320, window_size=8, pad by one window (8 bytes of value 256).
    # tnw=16 / n_split=2 exercises multi-tile accumulation, the two-split
    # (v7x) reduction, the straddling-mask path and the tile-skip path.
    B, INPUT_LENGTH, WINDOW, PAD = 2, 320, 8, 8

    key = jax.random.PRNGKey(0)
    kx, kp = jax.random.split(key)
    x_bytes = jax.random.randint(kx, (B, INPUT_LENGTH), 0, 256, dtype=jnp.int32)
    params = _init_params(kp, WINDOW)

    out = malconv_padding_forward(x_bytes, params,
                                  input_length=INPUT_LENGTH,
                                  window_size=WINDOW, pad_len=PAD,
                                  tnw=16, n_split=2)
    out = jax.block_until_ready(out)

    ref = _reference(x_bytes, params, input_length=INPUT_LENGTH,
                     window_size=WINDOW, pad_len=PAD)
    assert out.shape == (B, 1), out.shape
    assert jnp.allclose(out, ref, atol=5e-3, rtol=5e-3), (out, ref)
    print("KERNEL_OK")
</pallas_src>

<mosaic_0001>
module attributes {stable_mosaic.version = 11 : i64} {
  func.func @_malconv_pool_kernel(%arg0: i32, %arg1: i32, %arg2: i32, %arg3: memref<1x16x64xbf16, #tpu.memory_space<vmem>>, %arg4: memref<64x256xbf16, #tpu.memory_space<vmem>>, %arg5: memref<1x256xf32, #tpu.memory_space<vmem>>, %arg6: memref<1x1x1x128xf32, #tpu.memory_space<vmem>>) attributes {dimension_semantics = [#tpu.dimension_semantics<parallel>, #tpu.dimension_semantics<parallel>, #tpu.dimension_semantics<arbitrary>], iteration_bounds = array<i64: 2, 2, 2>, scalar_prefetch = 0 : i64, scratch_operands = 0 : i64, tpu.core_type = #tpu.core_type<tc>, window_params = [{transform_indices = @transform_0, window_bounds = array<i64: 1, 16, 64>}, {pipeline_mode = #tpu.pipeline_mode<synchronous>, transform_indices = @transform_1, window_bounds = array<i64: 64, 256>}, {pipeline_mode = #tpu.pipeline_mode<synchronous>, transform_indices = @transform_2, window_bounds = array<i64: 1, 256>}, {transform_indices = @transform_3, window_bounds = array<i64: 1, 1, 1, 128>}]} {
    %c2_i32 = arith.constant 2 : i32
    %0 = arith.muli %arg1, %c2_i32 : i32
    %1 = arith.addi %0, %arg2 : i32
    %c16_i32 = arith.constant 16 : i32
    %2 = arith.muli %1, %c16_i32 : i32
    %c0_i32 = arith.constant 0 : i32
    %3 = arith.cmpi eq, %arg2, %c0_i32 : i32
    %4 = arith.extui %3 : i1 to i32
    %c0_i32_0 = arith.constant 0 : i32
    %5 = arith.cmpi ne, %4, %c0_i32_0 : i32
    scf.if %5 {
      %cst = arith.constant 0xFF800000 : f32
      %9 = vector.broadcast %cst : f32 to vector<1x128xf32>
      %c0 = arith.constant 0 : index
      %c0_2 = arith.constant 0 : index
      %c0_3 = arith.constant 0 : index
      %c0_4 = arith.constant 0 : index
      %10 = vector.load %arg6[%c0, %c0_2, %c0_3, %c0_4] : memref<1x1x1x128xf32, #tpu.memory_space<vmem>>, vector<1x1x1x128xf32>
      %11 = vector.shape_cast %10 : vector<1x1x1x128xf32> to vector<1x128xf32>
      %12 = vector.shape_cast %9 : vector<1x128xf32> to vector<1x1x1x128xf32>
      tpu.vector_store %arg6[%c0, %c0_2, %c0_3, %c0_4], %12 {strides = array<i32>} : memref<1x1x1x128xf32, #tpu.memory_space<vmem>>, vector<1x1x1x128xf32>,
    } else {
    }
    %c40_i32 = arith.constant 40 : i32
    %6 = arith.cmpi slt, %2, %c40_i32 : i32
    %7 = arith.extui %6 : i1 to i32
    %c0_i32_1 = arith.constant 0 : i32
    %8 = arith.cmpi ne, %7, %c0_i32_1 : i32
    scf.if %8 {
      %c0 = arith.constant 0 : index
      %c0_2 = arith.constant 0 : index
      %c0_3 = arith.constant 0 : index
      %9 = vector.load %arg3[%c0, %c0_2, %c0_3] : memref<1x16x64xbf16, #tpu.memory_space<vmem>>, vector<1x16x64xbf16>
      %10 = vector.shape_cast %9 : vector<1x16x64xbf16> to vector<16x64xbf16>
      %c0_4 = arith.constant 0 : index
      %c0_5 = arith.constant 0 : index
      %11 = vector.load %arg4[%c0_4, %c0_5] : memref<64x256xbf16, #tpu.memory_space<vmem>>, vector<64x256xbf16>
      %cst = arith.constant dense<0.000000e+00> : vector<16x256xf32>
      %12 = tpu.matmul %10, %11, %cst {dimension_numbers = #tpu.dot_dimension_numbers<[1], [0], [0], [1], [0, 0, 1, 1], [], []>} : vector<16x64xbf16>, vector<64x256xbf16>, vector<16x256xf32> -> vector<16x256xf32>
      %c0_6 = arith.constant 0 : index
      %c0_7 = arith.constant 0 : index
      %13 = vector.load %arg5[%c0_6, %c0_7] : memref<1x256xf32, #tpu.memory_space<vmem>>, vector<1x256xf32>
      %14 = vector.broadcast %13 : vector<1x256xf32> to vector<16x256xf32>
      %15 = arith.addf %12, %14 : vector<16x256xf32>
      %16 = vector.extract_strided_slice %15 {offsets = [0, 0], sizes = [16, 128], strides = [1, 1]} : vector<16x256xf32> to vector<16x128xf32>
      %17 = vector.extract_strided_slice %15 {offsets = [0, 128], sizes = [16, 128], strides = [1, 1]} : vector<16x256xf32> to vector<16x128xf32>
      %18 = arith.negf %17 : vector<16x128xf32>
      %19 = math.exp %18 : vector<16x128xf32>
      %cst_8 = arith.constant 1.000000e+00 : f32
      %20 = vector.broadcast %cst_8 : f32 to vector<16x128xf32>
      %21 = arith.addf %20, %19 : vector<16x128xf32>
      %22 = arith.divf %20, %21 : vector<16x128xf32>
      %23 = arith.mulf %16, %22 : vector<16x128xf32>
      %c16_i32_9 = arith.constant 16 : i32
      %24 = arith.addi %2, %c16_i32_9 : i32
      %c40_i32_10 = arith.constant 40 : i32
      %25 = arith.cmpi sle, %24, %c40_i32_10 : i32
      %26 = arith.extui %25 : i1 to i32
      %c0_i32_11 = arith.constant 0 : i32
      %27 = arith.cmpi ne, %26, %c0_i32_11 : i32
      scf.if %27 {
        %c0_15 = arith.constant 0 : index
        %c0_16 = arith.constant 0 : index
        %c0_17 = arith.constant 0 : index
        %c0_18 = arith.constant 0 : index
        %32 = vector.load %arg6[%c0_15, %c0_16, %c0_17, %c0_18] : memref<1x1x1x128xf32, #tpu.memory_space<vmem>>, vector<1x1x1x128xf32>
        %33 = vector.shape_cast %32 : vector<1x1x1x128xf32> to vector<1x128xf32>
        %cst_19 = arith.constant dense<0xFF800000> : vector<128xf32>
        %34 = vector.multi_reduction <maximumf>, %23, %cst_19 [0] : vector<16x128xf32> to vector<128xf32>
        %35 = vector.shape_cast %34 : vector<128xf32> to vector<1x128xf32>
        %36 = arith.maximumf %33, %35 : vector<1x128xf32>
        %c0_20 = arith.constant 0 : index
        %c0_21 = arith.constant 0 : index
        %c0_22 = arith.constant 0 : index
        %c0_23 = arith.constant 0 : index
        %37 = vector.load %arg6[%c0_20, %c0_21, %c0_22, %c0_23] : memref<1x1x1x128xf32, #tpu.memory_space<vmem>>, vector<1x1x1x128xf32>
        %38 = vector.shape_cast %37 : vector<1x1x1x128xf32> to vector<1x128xf32>
        %39 = vector.shape_cast %36 : vector<1x128xf32> to vector<1x1x1x128xf32>
        tpu.vector_store %arg6[%c0_20, %c0_21, %c0_22, %c0_23], %39 {strides = array<i32>} : memref<1x1x1x128xf32, #tpu.memory_space<vmem>>, vector<1x1x1x128xf32>,
      } else {
      }
      %c16_i32_12 = arith.constant 16 : i32
      %28 = arith.addi %2, %c16_i32_12 : i32
      %c40_i32_13 = arith.constant 40 : i32
      %29 = arith.cmpi sgt, %28, %c40_i32_13 : i32
      %30 = arith.extui %29 : i1 to i32
      %c0_i32_14 = arith.constant 0 : i32
      %31 = arith.cmpi ne, %30, %c0_i32_14 : i32
      scf.if %31 {
        %32 = tpu.iota {dimensions = array<i32: 0>} : vector<16x128xi32>
        %33 = vector.broadcast %2 : i32 to vector<16x128xi32>
        %34 = arith.addi %32, %33 : vector<16x128xi32>
        %c40_i32_15 = arith.constant 40 : i32
        %35 = vector.broadcast %c40_i32_15 : i32 to vector<16x128xi32>
        %36 = arith.cmpi slt, %34, %35 : vector<16x128xi32>
        %cst_16 = arith.constant 0xFF800000 : f32
        %37 = vector.broadcast %cst_16 : f32 to vector<16x128xf32>
        %38 = arith.select %36, %23, %37 : vector<16x128xi1>, vector<16x128xf32>
        %c0_17 = arith.constant 0 : index
        %c0_18 = arith.constant 0 : index
        %c0_19 = arith.constant 0 : index
        %c0_20 = arith.constant 0 : index
        %39 = vector.load %arg6[%c0_17, %c0_18, %c0_19, %c0_20] : memref<1x1x1x128xf32, #tpu.memory_space<vmem>>, vector<1x1x1x128xf32>
        %40 = vector.shape_cast %39 : vector<1x1x1x128xf32> to vector<1x128xf32>
        %cst_21 = arith.constant dense<0xFF800000> : vector<128xf32>
        %41 = vector.multi_reduction <maximumf>, %38, %cst_21 [0] : vector<16x128xf32> to vector<128xf32>
        %42 = vector.shape_cast %41 : vector<128xf32> to vector<1x128xf32>
        %43 = arith.maximumf %40, %42 : vector<1x128xf32>
        %c0_22 = arith.constant 0 : index
        %c0_23 = arith.constant 0 : index
        %c0_24 = arith.constant 0 : index
        %c0_25 = arith.constant 0 : index
        %44 = vector.load %arg6[%c0_22, %c0_23, %c0_24, %c0_25] : memref<1x1x1x128xf32, #tpu.memory_space<vmem>>, vector<1x1x1x128xf32>
        %45 = vector.shape_cast %44 : vector<1x1x1x128xf32> to vector<1x128xf32>
        %46 = vector.shape_cast %43 : vector<1x128xf32> to vector<1x1x1x128xf32>
        tpu.vector_store %arg6[%c0_22, %c0_23, %c0_24, %c0_25], %46 {strides = array<i32>} : memref<1x1x1x128xf32, #tpu.memory_space<vmem>>, vector<1x1x1x128xf32>,
      } else {
      }
    } else {
    }
    return
  }
  func.func @transform_0(%arg0: i32, %arg1: i32, %arg2: i32) -> (i32, i32, i32) {
    %c2_i32 = arith.constant 2 : i32
    %0 = arith.muli %arg1, %c2_i32 : i32
    %1 = arith.addi %0, %arg2 : i32
    %c2_i32_0 = arith.constant 2 : i32
    %2 = arith.minsi %1, %c2_i32_0 : i32
    %c0_i32 = arith.constant 0 : i32
    %c0_i32_1 = arith.constant 0 : i32
    return %arg0, %2, %c0_i32 : i32, i32, i32
  }
  func.func @transform_1(%arg0: i32, %arg1: i32, %arg2: i32) -> (i32, i32) {
    %c0_i32 = arith.constant 0 : i32
    %c0_i32_0 = arith.constant 0 : i32
    %c0_i32_1 = arith.constant 0 : i32
    return %c0_i32, %c0_i32_0 : i32, i32
  }
  func.func @transform_2(%arg0: i32, %arg1: i32, %arg2: i32) -> (i32, i32) {
    %c0_i32 = arith.constant 0 : i32
    %c0_i32_0 = arith.constant 0 : i32
    %c0_i32_1 = arith.constant 0 : i32
    return %c0_i32, %c0_i32_0 : i32, i32
  }
  func.func @transform_3(%arg0: i32, %arg1: i32, %arg2: i32) -> (i32, i32, i32, i32) {
    %c0_i32 = arith.constant 0 : i32
    %c0_i32_0 = arith.constant 0 : i32
    %c0_i32_1 = arith.constant 0 : i32
    return %arg0, %arg1, %c0_i32, %c0_i32_0 : i32, i32, i32, i32
  }
}

</mosaic_0001>

<bundles_post_ra>
// kernel: tpu_custom_call.1
= control target key start
LH: loop header
LB: loop body
LE: loop exit
PB: predicated region body
PF: predicated region fallthrough
CT: control target
= control target key end

     0   :  { %8 = vsyncpa [#allocation3], 0  ;;  %s985_s0 = inlined_call_operand.vmem [shape: bf16[2,41,64], index: 0, kind: input, shape index: {}]   ;;  %s986_s1 = inlined_call_operand.vmem [shape: bf16[64,256], index: 1, kind: input, shape index: {}]   ;;  %s987_s2 = inlined_call_operand.vmem [shape: f32[1,256], index: 2, kind: input, shape index: {}]   ;;  %s988_s3 = inlined_call_operand.hbm [shape: f32[2,2,1,128], index: 3, kind: output, shape index: {}]  }
   0x1   :  { %10 = vsyncpa [#allocation3 + $0x1], 0  ;;  %s786_s12 = smov 0   ;;  %s788_s13 = smov 0  }
   0x2   :  { %s790_s14 = smov 0   ;;  %s792_s15 = smov 0  }
   0x3   :  { %s794_s16 = smov 0   ;;  %s796_s17 = smov 0  }
   0x4   :  { %s798_s18 = smov 0   ;;  %s800_s19 = smov 0  }
   0x5   :  { %s802_s20 = smov 0   ;;  %s804_s21 = smov 0  }
   0x6 LB: > { %s508_s22 = sadd.s32 4294967295, %s761_s21   ;;  %s509_s23 = sadd.s32 4294967294, %s761_s21   ;;  %s761_s21 = sphi %s804_s21, %s16_s21   ;;  %s757_s20 = sphi %s802_s20, %s1005_s20   ;;  %s753_s19 = sphi %s800_s19, %s1004_s19   ;;  %s749_s18 = sphi %s798_s18, %s1003_s18   ;;  %s745_s17 = sphi %s796_s17, %s1002_s17   ;;  %s741_s16 = sphi %s794_s16, %s1001_s16   ;;  %s737_s15 = sphi %s792_s15, %s1000_s15   ;;  %s733_s14 = sphi %s790_s14, %s999_s14   ;;  %s729_s13 = sphi %s788_s13, %s998_s13   ;;  %s725_s12 = sphi %s786_s12, %s997_s12  }
   0x7   : > { %s28_s24 = sadd.s32 1, %s749_s18  ;;  %s31_s25 = sadd.s32 1, %s753_s19 }
   0x8   : > { %p29_p0 = scmp.ge.s32.totalorder %s28_s24, 2  ;;  %s35_s26 = sadd.s32 1, %s757_s20 }
   0x9   : > { %p132_p1 = scmp.ne.s32.totalorder %s733_s14, %s729_s13  ;;  %p133_p2 = scmp.eq.s32.totalorder %s508_s22, 7 }
   0xa   : > { %s1007_s24 = smov (%p29_p0, %s28_s24), 0  ;;  %s1009_s25 = smov (!%p29_p0, %s31_s25), %s753_s19 }
   0xb   : > { %p138_p3 = scmp.ne.s32.totalorder %s729_s13, %s725_s12  ;;  %p33_p4 = scmp.ge.s32.totalorder %s1009_s25, 2 }
   0xc   : > { %p139_p5 = scmp.eq.s32.totalorder %s509_s23, 7  ;;  %p848_p6 = por %p133_p2, %p132_p1 }
   0xd   : > { %s1011_s25 = smov (%p33_p4, %s1009_s25), 0  ;;  %s1013_s26 = smov (!%p33_p4, %s35_s26), %s757_s20 }
   0xe   : > { %992 = sst [smem:[#allocation5_spill]] %s1011_s25  ;;  %p855_p7 = por %p139_p5, %p138_p3 }
   0xf   : > { %p514_p8 = scmp.ge.s32.totalorder %s761_s21, 1  ;;  %p37_p9 = scmp.ge.s32.totalorder %s1013_s26, 2 }
  0x10   : > { %p184_p10 = scmp.lt.s32.totalorder %s761_s21, 9  ;;  %s118_s29 = ssub.s32 %s753_s19, %s1011_s25 }
  0x11   : > { %s1015_s26 = smov (%p37_p9, %s1013_s26), 0  ;;  %s122_s5 = sadd.s32 1, %s733_s14 }
  0x12   : > { %994 = sst [smem:[#allocation6_spill]] %s1015_s26  ;;  %p185_p11 = pnand %p514_p8, %p184_p10 }
  0x13   : > { %s117_s30 = ssub.s32 %s757_s20, %s1015_s26  ;;  %s213_s7 = sand.u32 (!%p185_p11), 1, %s729_s13  }
  0x14   : > { %s119_s4 = sor.u32 %s118_s29, %s117_s30  ;;  %188 = sbr.rel (%p185_p11) target bundleno = 366 (0x16e), region = 32 }
  0x15   : > { %p120_p12 = scmp.eq.s32.totalorder %s119_s4, 0  ;;  %s515_s8 = sshll.u32 (!%p185_p11), %s741_s16, 1 }
  0x16   : > { %s216_s9 = sadd.s32 (!%p185_p11), %s737_s15, %s515_s8  ;;  %p220_p0 = scmp.lt.s32.totalorder (!%p185_p11), %s745_s17, 1 }
  0x17   : > { %s869_s6 = scalar_select %p120_p12, %s733_s14, %s122_s5  }
  0x18   : > { %p217_p13 = scmp.lt.s32.totalorder (!%p185_p11), %s216_s9, 2  ;;  %s875_s10 = sshll.u32 (!%p185_p11), %s216_s9, 4 }
  0x19   : > { %s883_s25 = scalar_lea.vmem (!%p185_p11), [#allocation2], %s213_s7  ;;  %p520_p2 = scmp.ne.s32.totalorder (!%p185_p11), %s737_s15, 0 }
  0x1b   : > { %s1017_s9 = smov (!%p217_p13, %s216_s9), 2  ;;  %v763_v0 = vmov (!%p520_p2), -inf  }
  0x1c   : > { %s221_s11 = scalar_select %p220_p0, %s745_s17, 1 }
  0x1d   : > { %s516_s22 = sshll.u32 %s1017_s9, 1  ;;  %240 = sbr.rel (%p520_p2) target bundleno = 36 (0x24), region = 36  ;;  %241 = vst [vmem:[%s883_s25] sm:$0x1] (!%p520_p2), %v763_v0 }
  0x1e   : > { %p222_p1 = scmp.lt.s32.totalorder %s516_s22, 5  ;;  %s540_s23 = smul.u32 6, %s221_s11 }
  0x20   : > { %s1019_s22 = smov (!%p222_p1, %s516_s22), 5 }
  0x21   : > { %s225_s29 = sadd.s32 %s540_s23, %s1019_s22 }
  0x22   : > { %s517_s30 = sshll.u32 %s225_s29, 2 }
  0x23   : > { %s227_s26 = scalar_lea.vmem %s985_s0, %s517_s30 }
  0x24 PF: > { %p521_p3 = scmp.ge.s32.totalorder %s875_s10, 40 }
  0x25   : > { %v630_v1 = vld [vmem:[%s986_s1 + $0x4] ss:$8 sps:$4 sm:$0xff] (!%p521_p3)   ;;  %v632_v2 = vld [vmem:[%s986_s1] ss:$8 sps:$4 sm:$0xff] (!%p521_p3)   ;;  %v764_v3 = vmov (!%p521_p3), 0   ;;  %vm313_vm0 = vcmask (!%p521_p3), 523264   ;;  %v258_v11 = vlaneseq (!%p521_p3) }
  0x26   : > { %245 = sbr.rel (%p521_p3) target bundleno = 340 (0x154), region = 40  ;;  %349 = vmatprep.mubr.bf16.mxu0 (!%p521_p3), %v764_v3  ;;  %317 = vmatprep.subr.bf16.mxu0 (!%p521_p3), %v630_v1  ;;  %v633_v4 = vld [vmem:[%s986_s1 + $0x14] ss:$8 sps:$4 sm:$0xff] (!%p521_p3)   ;;  %v635_v5 = vld [vmem:[%s986_s1 + $0x10] ss:$8 sps:$4 sm:$0xff] (!%p521_p3)   ;;  %v642_v10 = vld [vmem:[%s227_s26] sm:$0xff] (!%p521_p3)  }
  0x27   : > { %318 = vmatpush1.bf16.msra.mxu0 (!%p521_p3), %v632_v2  ;;  %v636_v6 = vld [vmem:[%s986_s1 + $0x24] ss:$8 sps:$4 sm:$0xff] (!%p521_p3)   ;;  %v638_v7 = vld [vmem:[%s986_s1 + $0x20] ss:$8 sps:$4 sm:$0xff] (!%p521_p3)   ;;  %v639_v8 = vld [vmem:[%s986_s1 + $0x34] ss:$8 sps:$4 sm:$0xff] (!%p521_p3)  }
  0x28   : > { %319 = vmatprep.subr.bf16.mxu0 (!%p521_p3), %v633_v4  ;;  %v641_v9 = vld [vmem:[%s986_s1 + $0x30] ss:$8 sps:$4 sm:$0xff] (!%p521_p3)   ;;  %s374_s29 = sadd.s32 (!%p521_p3), 16, %s875_s10  ;;  %v259_v12 = vshrl.u32 (!%p521_p3), %v258_v11, 7  ;;  %v256_v14 = vld [vmem:[%s987_s2] sm:$0x3] (!%p521_p3) }
  0x29   : > { %p534_p4 = scmp.gt.s32.totalorder (!%p521_p3), %s374_s29, 40 }
  0x2a   : > { %v264_v13 = vsub.s32 (!%p521_p3), 1, %v259_v12  ;;  %v260_v28 = vsub.s32 (!%p521_p3), 0, %v259_v12 }
  0x2b   : > { %320 = vmatpush1.bf16.msra.mxu0 (!%p521_p3), %v635_v5 }
  0x2c   : > { %321 = vmatprep.subr.bf16.mxu0 (!%p521_p3), %v636_v6  ;;  %v265_v15 = vrot.slane (!%p521_p3), %v256_v14, %v264_v13  ;;  %v261_v29 = vrot.slane (!%p521_p3), %v256_v14, %v260_v28 }
  0x2d   : > { %v379_v42 = vld [vmem:[%s883_s25] sm:$0x1] (!%p534_p4) }
  0x2f   : > { %322 = vmatpush1.bf16.msra.mxu0 %v638_v7 }
  0x30   : > { %323 = vmatprep.subr.bf16.mxu0 %v639_v8 }
  0x33   : > { %324 = vmatpush1.bf16.msra.mxu0 %v641_v9 }
  0x36   : > { %531 = vmatmul.mubr.msk.bf16.vlgmr.msra.gmra.mrb[0].mxu0 %vm313_vm0, %v642_v10 }
 0x109   : > { %v351_v16 = vpop.f32.mrb[0].mxu0 }
 0x10a   : > { %v353_v17 = vpop.f32.mrb[1].mxu0  ;;  %v352_v30 = vadd.f32 %v351_v16, %v261_v29 }
 0x10b   : > { %v354_v18 = vadd.f32 %v353_v17, %v265_v15  ;;  %v355_v19 = vpop.f32.mrb[2].mxu0 }
 0x10c   : > { %v357_v20 = vpop.f32.mrb[3].mxu0  ;;  %v356_v33 = vadd.f32 %v355_v19, %v261_v29 }
 0x10d   : > { %v532_v21 = vmul.f32 -1.442695, %v354_v18  ;;  %v358_v22 = vadd.f32 %v357_v20, %v265_v15 }
 0x10f   : > { %643 = vpow2.f32 %v532_v21  ;;  %v533_v23 = vmul.f32 -1.442695, %v358_v22 }
 0x111   : > { %645 = vpow2.f32 %v533_v23 }
 0x119   : > { %v644_v24 = vpop.eup %643 }
 0x11a   : > { %v366_v25 = vadd.f32 1.0, %v644_v24 }
 0x11b   : > { %v646_v26 = vpop.eup %645 }
 0x11c   : > { %647 = vrcp.f32 %v366_v25  ;;  %v367_v27 = vadd.f32 1.0, %v646_v26 }
 0x11e   : > { %649 = vrcp.f32 %v367_v27 }
 0x123   : > { %378 = sbr.rel (%p534_p4) target bundleno = 316 (0x13c), region = 44 }
 0x126   : > { %v648_v31 = vpop.eup %647 }
 0x127   : > { %v372_v32 = vmul.f32 %v648_v31, %v352_v30 }
 0x128   : > { %v650_v34 = vpop.eup %649 }
 0x129   : > { %v373_v35 = vmul.f32 %v650_v34, %v356_v33 }
 0x12b   : > { %v380_v36 = vmax.f32 %v372_v32, %v373_v35 }
 0x12d   : > { %v381_v37 = vrot.slane %v380_v36, 4 }
 0x12f   : > { %v382_v38 = vmax.f32 %v380_v36, %v381_v37 }
 0x131   : > { %v383_v39 = vrot.slane %v382_v38, 2 }
 0x133   : > { %v384_v40 = vmax.f32 %v382_v38, %v383_v39 }
 0x135   : > { %v385_v41 = vrot.slane %v384_v40, 1 }
 0x137   : > { %v386_v43 = vmax.f32 %v384_v40, %v385_v41 }
 0x139   : > { %v387_v44 = vmax.f32 %v379_v42, %v386_v43 }
 0x13b   : > { %388 = vst [vmem:[%s883_s25] sm:$0x1] %v387_v44 }
 0x13c PF: > { %p535_p5 = scmp.le.s32.totalorder %s374_s29, 40 }
 0x13d   : > { %v395_v45 = vadd.s32 (!%p535_p5), 8, %v259_v12  ;;  %v396_v46 = vstv (!%p535_p5), %s875_s10 }
 0x13e   : > { %392 = sbr.rel (%p535_p5) target bundleno = 340 (0x154), region = 48  ;;  %v397_v47 = vadd.s32 (!%p535_p5), %v396_v46, %v259_v12 }
 0x13f   : > { %v398_v48 = vadd.s32 (!%p535_p5), %v396_v46, %v395_v45 }
 0x140   : > { %vm399_vm1 = vcmp.lt.s32.totalorder (!%p535_p5), %v397_v47, 40 }
 0x141   : > { %vm400_vm2 = vcmp.lt.s32.totalorder (!%p535_p5), %v398_v48, 40  ;;  %v401_v49 = vsel (!%p535_p5), %vm399_vm1, %v372_v32, -inf }
 0x142   : > { %v402_v50 = vsel (!%p535_p5), %vm400_vm2, %v373_v35, -inf  ;;  %v403_v57 = vld [vmem:[%s883_s25] sm:$0x1] (!%p535_p5) }
 0x143   : > { %v404_v51 = vmax.f32 (!%p535_p5), %v401_v49, %v402_v50 }
 0x145   : > { %v405_v52 = vrot.slane %v404_v51, 4 }
 0x147   : > { %v406_v53 = vmax.f32 %v404_v51, %v405_v52 }
 0x149   : > { %v407_v54 = vrot.slane %v406_v53, 2 }
 0x14b   : > { %v408_v55 = vmax.f32 %v406_v53, %v407_v54 }
 0x14d   : > { %v409_v56 = vrot.slane %v408_v55, 1 }
 0x14f   : > { %v410_v58 = vmax.f32 %v408_v55, %v409_v56 }
 0x151   : > { %v411_v59 = vmax.f32 %v403_v57, %v410_v58 }
 0x153   : > { %412 = vst [vmem:[%s883_s25] sm:$0x1] %v411_v59 }
 0x154 PF: > { %s536_s26 = sshll.u32 %s745_s17, 1  ;;  %s428_s5 = sshll.u32 %s883_s25, 4  ;;  %s928_s5 = int_to_ptr.vmem [resolvable:$true] %s428_s5 }
 0x155   : > { %s424_s10 = sadd.s32 %s741_s16, %s536_s26  ;;  %s414_s15 = scalar_lea.sflag [#allocation3], %s213_s7 }
 0x156   : > { %s537_s8 = sshll.u32 %s424_s10, 4  ;;  %s651_s23 = scalar_lea.vmem %s928_s5, 16 }
 0x157   : > { %s426_s22 = scalar_lea.hbm %s988_s3, %s537_s8  ;;  %p652_p8 = scmp.ne.s32.totalorder %s928_s5, %s651_s23 }
 0x158   : > { %s765_s17 = smov [#allocation2]  }
 0x159   : > { %p653_p9 = pnand %p652_p8, %p848_p6  ;;  %s655_s16 = sshll.u32 %s765_s17, 4  ;;  %s656_s16 = int_to_ptr.vmem [resolvable:$false] %s655_s16 }
 0x15a   : > { %s657_s25 = scalar_lea.vmem %s656_s16, 32  ;;  %p658_p11 = scmp.lt.s32.totalorder %s928_s5, %s656_s16 }
 0x15b   : > { %p654_p10 = pneg %p653_p9  ;;  %p659_p12 = scmp.lt.s32.totalorder %s657_s25, %s651_s23 }
 0x15d   : > { %p660_p13 = por %p659_p12, %p658_p11 }
 0x15f   : > { %p661_p0 = pnand %p660_p13, %p654_p10 }
 0x161   : > { %664 = shalt.err (!%p661_p0)
}
 0x162   : > { %s665_s29 = scalar_lea.hbm %s426_s22, 16  ;;  %s669_s4 = scalar_lea.hbm %s988_s3, 64 }
 0x163   : > { %p666_p1 = scmp.ne.s32.totalorder %s426_s22, %s665_s29  ;;  %p670_p4 = scmp.lt.u32.totalorder %s426_s22, %s988_s3 }
 0x164   : > { %p671_p5 = scmp.lt.u32.totalorder %s669_s4, %s665_s29  ;;  %p673_p9 = scmp.lt.u32.totalorder %s665_s29, %s426_s22 }
 0x165   : > { %p667_p2 = pnand %p666_p1, %p848_p6 }
 0x166   : > { %p672_p8 = por %p671_p5, %p670_p4 }
 0x167   : > { %p668_p3 = pneg %p667_p2 }
 0x168   : > { %p674_p11 = por %p673_p9, %p672_p8 }
 0x16a   : > { %p675_p10 = pnand %p674_p11, %p668_p3 }
 0x16c   : > { %678 = shalt.err (!%p675_p10)
}
 0x16d   : > { %541 = dma.vmem_to_hbm [thread:$0]  (%p848_p6), %s928_s5, 16, %s426_s22, %s414_s15  }
 0x16e PF: > { %p547_p12 = scmp.ge.s32.totalorder %s761_s21, 2  ;;  %s440_s8 = sand.u32 1, %s725_s12  }
 0x16f   : > { %s441_s9 = scalar_lea.sflag [#allocation3], %s440_s8 }
 0x170   : > { %p544_p13 = pnand %p547_p12, %p855_p7 }
 0x172   : > { %720 = dma.done.wait (!%p544_p13), %s441_s9, 16  }
 0x173   : > { %722 = vsyncadd (!%p544_p13), %s441_s9, 4294967280  ;;  %s16_s21 = sadd.s32 1, %s761_s21   ;;  %s995_s27 = sld [smem:[#allocation5_spill]] }
 0x174   : > { %p13_p0 = scmp.ge.s32.totalorder %s16_s21, 10   ;;  %s996_s5 = sld [smem:[#allocation6_spill]] }
 0x175   : > { %s997_s12 = smov %s729_s13  ;;  %s998_s13 = smov %s733_s14 }
 0x176   : > { %s999_s14 = smov %s869_s6  ;;  %s1000_s15 = smov %s749_s18 }
 0x177   : > { %s1001_s16 = smov %s753_s19  ;;  %s1002_s17 = smov %s757_s20 }
 0x178   : > { %s1003_s18 = smov %s1007_s24  ;;  %15 = sbr.rel (!%p13_p0) target bundleno = 6 (0x6), region = 83 }
 0x179   : > { %s1004_s19 = smov %s995_s27 }
 0x17a   : > { %s1005_s20 = smov %s996_s5 }
 0x17f   :  { %445 = vsyncpa [#allocation3], 1 }
 0x180   :  { %447 = vsyncpa [#allocation3 + $0x1], 1 }

</bundles_post_ra>
